<compile_context>
chip_gen: v5e
topology: v5e:2x2
jax: 0.10.0
libtpu: 0.0.40
codegen_flags: <defaults>
</compile_context>

<pallas_src>
import functools

import jax
import jax.numpy as jnp
from jax import lax
from jax.experimental import pallas as pl
from jax.experimental.pallas import tpu as pltpu


def _pae_kernel(pair_ref, sl_ref, sr_ref, w_ref, out_ref, *, TI, L, DP, NB):
    # pair_ref : (1, TI, L, DP)   rows i in [i0, i0+TI), all j
    # sl_ref   : (1, TI, NB)      f32, state @ W_left + bias for these rows
    # sr_ref   : (1, L, NB)       f32, state @ W_right for all columns
    # w_ref    : (DP, NB)         pair-part of the Linear weight
    # out_ref  : (1, NB, TI*L)    channels-first, lane-dense store
    #
    # Contract the pair block on its 3-D view (no reshape of the DP-minor
    # block, so non-128-aligned DP does not force a VMEM relayout copy).
    lp = lax.dot_general(pair_ref[0], w_ref[...],
                         dimension_numbers=(((2,), (0,)), ((), ())),
                         preferred_element_type=jnp.float32)      # (TI, L, NB)
    out = (lp
           + sl_ref[0][:, None, :]       # per-row term (broadcast over j)
           + sr_ref[0][None, :, :])      # per-col term (broadcast over i)
    # Fused permute(0,3,1,2): cast first (halves XLU/transpose bytes for bf16
    # outputs), then a 2-D transpose (TI*L, NB) -> (NB, TI*L); the stored last
    # dim is TI*L, a multiple of 128 -> unmasked lane-dense vst.
    res = out.astype(out_ref.dtype)
    out_ref[0] = res.reshape(TI * L, NB).T


def _round_up(x, m):
    return -(-x // m) * m


def _default_vmem_limit_bytes():
    """~55% of the physical per-core VMEM (capped), so the same kernel config
    is safe on v7x (64 MiB) as well as v5e/v6e (128 MiB)."""
    try:
        cap = pltpu.get_tpu_info().vmem_capacity_bytes
    except Exception:  # off-device tracing / interpret mode
        cap = 64 * 1024 * 1024
    return min(int(0.55 * cap), 64 * 1024 * 1024)


def _valid_tiles(L):
    return [t for t in range(1, L + 1)
            if L % t == 0 and (t * L) % 128 == 0 and (t % 8 == 0 or t == L)]


def _tile_vmem_bytes(t, L, DP, NB, in_isz, out_isz):
    """Conservative per-step VMEM working set for row tile t (lane-padded)."""
    NB_lane = _round_up(NB, 128)          # 64-wide f32 temps pad to 128 lanes
    DP_lane = _round_up(DP, 128)
    pair_blk = 2 * t * L * DP_lane * in_isz            # double-buffered pair
    out_blk = 2 * _round_up(NB, 8) * t * L * out_isz   # double-buffered output
    sl_blk = 2 * _round_up(max(t, 8), 8) * NB_lane * 4
    sr_blk = 2 * _round_up(L, 8) * NB_lane * 4
    w_blk = 2 * _round_up(DP, 8) * NB_lane * in_isz
    temps = 3 * t * L * NB_lane * 4                    # lp / sum / transpose
    scratch = 2 * 1024 * 1024                          # Mosaic internal scratch
    return pair_blk + out_blk + sl_blk + sr_blk + w_blk + temps + scratch


def _choose_tile_i(B, L, DP, NB, in_isz, out_isz, budget_bytes):
    """Smallest row tile that saturates the HBM pipeline, keeps >=4 grid steps
    (so both v7x TensorCores get work), and fits the VMEM budget."""
    cands = _valid_tiles(L)
    if not cands:
        # TODO(synk): pad L (rows) so a (TI*L) % 128 == 0 tile exists for ragged L.
        raise ValueError(
            f"L={L}: no row tile TI with (TI*L) % 128 == 0; pad L.")

    fitting = [t for t in cands
               if _tile_vmem_bytes(t, L, DP, NB, in_isz, out_isz) <= budget_bytes]
    if not fitting:
        raise ValueError(
            f"No row tile fits the VMEM budget ({budget_bytes} bytes) for "
            f"L={L}, DP={DP}, NB={NB}; raise vmem_limit_bytes.")

    # Prefer tiles that keep at least 4 parallel grid steps (v7x has 2 TCs).
    par = [t for t in fitting if B * (L // t) >= 4] or fitting

    target_pair_bytes = 2 * 1024 * 1024     # ~2 MiB pair block saturates DMA
    min_row_dma_bytes = 8 * 1024            # >= 8 KB per output-row DMA
    good = [t for t in par
            if t * L * DP * in_isz >= target_pair_bytes
            and t * L * out_isz >= min_row_dma_bytes]
    if good:
        return min(good)      # smallest tile that already saturates HBM
    return max(par)           # small problem: take the largest fitting tile


def pae_network(pair, state, weight, bias, *, out_dtype=None, tile_i=None,
                vmem_limit_bytes=None):
    """pair: (B, L, L, DP), state: (B, L, DS)  (f32 or bf16),
       weight: (n_feat, n_bin) input-major (i.e. torch proj.weight.T),
       bias: (n_bin,).
       Returns logits in PyTorch layout (B, n_bin, L, L)."""
    B, L, L2, DP = pair.shape
    assert L2 == L
    DS = state.shape[-1]
    NF, NB = weight.shape
    assert NF == DP + 2 * DS

    in_dtype = pair.dtype
    out_dtype = in_dtype if out_dtype is None else jnp.dtype(out_dtype)
    in_isz = jnp.dtype(in_dtype).itemsize
    out_isz = jnp.dtype(out_dtype).itemsize

    if vmem_limit_bytes is None:
        vmem_limit_bytes = _default_vmem_limit_bytes()

    # Split the Linear weight along its input-feature axis.
    w_pair = weight[:DP].astype(in_dtype)
    w_left = weight[DP:DP + DS]
    w_right = weight[DP + DS:]

    # Hoisted per-row terms (tiny matmuls, done once); bias folded into sl.
    sl = (jnp.einsum("bld,dc->blc", state, w_left,
                     preferred_element_type=jnp.float32)
          + bias.astype(jnp.float32))
    sr = jnp.einsum("bld,dc->blc", state, w_right,
                    preferred_element_type=jnp.float32)

    if tile_i is None:
        TI = _choose_tile_i(B, L, DP, NB, in_isz, out_isz,
                            budget_bytes=int(0.9 * vmem_limit_bytes))
    else:
        TI = tile_i
        if not (L % TI == 0 and (TI * L) % 128 == 0 and (TI % 8 == 0 or TI == L)):
            raise ValueError(
                f"tile_i={TI} invalid for L={L}: need L % TI == 0, "
                f"(TI*L) % 128 == 0 and (TI % 8 == 0 or TI == L).")

    kern = functools.partial(_pae_kernel, TI=TI, L=L, DP=DP, NB=NB)

    flops = 2 * B * L * L * DP * NB
    bytes_accessed = (B * L * L * DP * in_isz          # pair read
                      + 2 * B * L * NB * 4             # sl + sr reads
                      + DP * NB * in_isz               # weight read
                      + B * NB * L * L * out_isz)      # output write

    logits_flat = pl.pallas_call(
        kern,
        out_shape=jax.ShapeDtypeStruct((B, NB, L * L), out_dtype),
        grid_spec=pltpu.PrefetchScalarGridSpec(
            num_scalar_prefetch=0,
            grid=(B, L // TI),
            in_specs=[
                pl.BlockSpec((1, TI, L, DP), lambda b, i: (b, i, 0, 0)),
                pl.BlockSpec((1, TI, NB), lambda b, i: (b, i, 0)),
                pl.BlockSpec((1, L, NB), lambda b, i: (b, 0, 0)),
                pl.BlockSpec((DP, NB), lambda b, i: (0, 0)),
            ],
            out_specs=pl.BlockSpec((1, NB, TI * L), lambda b, i: (b, 0, i)),
        ),
        compiler_params=pltpu.CompilerParams(
            dimension_semantics=("parallel", "parallel"),
            vmem_limit_bytes=vmem_limit_bytes),
        cost_estimate=pl.CostEstimate(flops=flops, transcendentals=0,
                                      bytes_accessed=bytes_accessed),
    )(pair, sl, sr, w_pair)

    # Free metadata reshape; the permute itself was fused into the kernel store.
    return logits_flat.reshape(B, NB, L, L)


def pae_network_ref(pair, state, weight, bias):
    """Pure-JAX reference mirroring the PyTorch forward exactly (f32)."""
    B, L = pair.shape[0], pair.shape[1]
    left = jnp.broadcast_to(state[:, :, None, :], (B, L, L, state.shape[-1]))
    right = jnp.broadcast_to(state[:, None, :, :], (B, L, L, state.shape[-1]))
    feat = jnp.concatenate([pair, left, right], axis=-1)
    logits = feat @ weight + bias
    return jnp.transpose(logits, (0, 3, 1, 2))


if __name__ == "__main__":
    # Small shapes: B=2, L=16, d_pair=32, d_state=16 -> n_feat=64, n_bin=64
    B, L, DP, DS, NB = 2, 16, 32, 16, 64
    NF = DP + 2 * DS

    key = jax.random.PRNGKey(0)
    k_pair, k_state, k_w, k_b = jax.random.split(key, 4)
    pair = jax.random.normal(k_pair, (B, L, L, DP), dtype=jnp.float32)
    state = jax.random.normal(k_state, (B, L, DS), dtype=jnp.float32)

    # NOTE: the PyTorch module's reset_parameter() zeroes the Linear weights,
    # which would make the output identically zero. Use deterministic nonzero
    # values so the computation is verifiable; forward semantics are identical.
    weight = 0.02 * jax.random.normal(k_w, (NF, NB), dtype=jnp.float32)
    bias = 0.01 * jax.random.normal(k_b, (NB,), dtype=jnp.float32)

    ref = pae_network_ref(pair, state, weight, bias)

    # f32 path — strict check.
    out = pae_network(pair, state, weight, bias)
    jax.block_until_ready(out)
    assert out.shape == (B, NB, L, L), out.shape
    assert jnp.allclose(out, ref, atol=1e-4, rtol=1e-4), (
        float(jnp.max(jnp.abs(out - ref))))

    # f32 inputs, bf16 output (halves the output HBM write) — loose tolerance.
    out_b = pae_network(pair, state, weight, bias, out_dtype=jnp.bfloat16)
    jax.block_until_ready(out_b)
    assert out_b.dtype == jnp.bfloat16
    assert jnp.allclose(out_b.astype(jnp.float32), ref, atol=5e-2, rtol=5e-2), (
        float(jnp.max(jnp.abs(out_b.astype(jnp.float32) - ref))))

    # bf16 fast path (halves the dominant pair read too) — loose tolerance.
    out_bf16 = pae_network(pair.astype(jnp.bfloat16), state.astype(jnp.bfloat16),
                           weight.astype(jnp.bfloat16), bias.astype(jnp.bfloat16))
    jax.block_until_ready(out_bf16)
    assert out_bf16.dtype == jnp.bfloat16
    assert jnp.allclose(out_bf16.astype(jnp.float32), ref, atol=5e-2, rtol=5e-2), (
        float(jnp.max(jnp.abs(out_bf16.astype(jnp.float32) - ref))))

    print("KERNEL_OK")
</pallas_src>

<mosaic_0001>
module attributes {stable_mosaic.version = 11 : i64} {
  func.func @_pae_kernel(%arg0: i32, %arg1: i32, %arg2: memref<1x8x16x32xf32, #tpu.memory_space<vmem>>, %arg3: memref<1x8x64xf32, #tpu.memory_space<vmem>>, %arg4: memref<1x16x64xf32, #tpu.memory_space<vmem>>, %arg5: memref<32x64xf32, #tpu.memory_space<vmem>>, %arg6: memref<1x64x128xf32, #tpu.memory_space<vmem>>) attributes {dimension_semantics = [#tpu.dimension_semantics<parallel>, #tpu.dimension_semantics<parallel>], iteration_bounds = array<i64: 2, 2>, scalar_prefetch = 0 : i64, scratch_operands = 0 : i64, tpu.core_type = #tpu.core_type<tc>, window_params = [{transform_indices = @transform_0, window_bounds = array<i64: 1, 8, 16, 32>}, {transform_indices = @transform_1, window_bounds = array<i64: 1, 8, 64>}, {transform_indices = @transform_2, window_bounds = array<i64: 1, 16, 64>}, {pipeline_mode = #tpu.pipeline_mode<synchronous>, transform_indices = @transform_3, window_bounds = array<i64: 32, 64>}, {transform_indices = @transform_4, window_bounds = array<i64: 1, 64, 128>}]} {
    %c0 = arith.constant 0 : index
    %c0_0 = arith.constant 0 : index
    %c0_1 = arith.constant 0 : index
    %c0_2 = arith.constant 0 : index
    %0 = vector.load %arg2[%c0, %c0_0, %c0_1, %c0_2] : memref<1x8x16x32xf32, #tpu.memory_space<vmem>>, vector<1x8x16x32xf32>
    %1 = vector.shape_cast %0 : vector<1x8x16x32xf32> to vector<8x16x32xf32>
    %c0_3 = arith.constant 0 : index
    %c0_4 = arith.constant 0 : index
    %2 = vector.load %arg5[%c0_3, %c0_4] : memref<32x64xf32, #tpu.memory_space<vmem>>, vector<32x64xf32>
    %cst = arith.constant dense<0.000000e+00> : vector<8x16x64xf32>
    %3 = tpu.matmul %1, %2, %cst {dimension_numbers = #tpu.dot_dimension_numbers<[2], [0], [0, 1], [1], [0, 0, 0, 1, 1, 1], [], []>} : vector<8x16x32xf32>, vector<32x64xf32>, vector<8x16x64xf32> -> vector<8x16x64xf32>
    %c0_5 = arith.constant 0 : index
    %c0_6 = arith.constant 0 : index
    %c0_7 = arith.constant 0 : index
    %4 = vector.load %arg3[%c0_5, %c0_6, %c0_7] : memref<1x8x64xf32, #tpu.memory_space<vmem>>, vector<1x8x64xf32>
    %5 = vector.shape_cast %4 : vector<1x8x64xf32> to vector<8x64xf32>
    %6 = vector.shape_cast %5 : vector<8x64xf32> to vector<8x1x64xf32>
    %7 = vector.broadcast %6 : vector<8x1x64xf32> to vector<8x16x64xf32>
    %8 = arith.addf %3, %7 : vector<8x16x64xf32>
    %c0_8 = arith.constant 0 : index
    %c0_9 = arith.constant 0 : index
    %c0_10 = arith.constant 0 : index
    %9 = vector.load %arg4[%c0_8, %c0_9, %c0_10] : memref<1x16x64xf32, #tpu.memory_space<vmem>>, vector<1x16x64xf32>
    %10 = vector.shape_cast %9 : vector<1x16x64xf32> to vector<16x64xf32>
    %11 = vector.shape_cast %10 : vector<16x64xf32> to vector<1x16x64xf32>
    %12 = vector.broadcast %11 : vector<1x16x64xf32> to vector<8x16x64xf32>
    %13 = arith.addf %8, %12 : vector<8x16x64xf32>
    %14 = vector.shape_cast %13 : vector<8x16x64xf32> to vector<128x64xf32>
    %15 = tpu.transpose %14, [1, 0] : vector<128x64xf32> -> vector<64x128xf32>
    %c0_11 = arith.constant 0 : index
    %c0_12 = arith.constant 0 : index
    %c0_13 = arith.constant 0 : index
    %16 = vector.load %arg6[%c0_11, %c0_12, %c0_13] : memref<1x64x128xf32, #tpu.memory_space<vmem>>, vector<1x64x128xf32>
    %17 = vector.shape_cast %16 : vector<1x64x128xf32> to vector<64x128xf32>
    %18 = vector.shape_cast %15 : vector<64x128xf32> to vector<1x64x128xf32>
    tpu.vector_store %arg6[%c0_11, %c0_12, %c0_13], %18 {strides = array<i32>} : memref<1x64x128xf32, #tpu.memory_space<vmem>>, vector<1x64x128xf32>,
    return
  }
  func.func @transform_0(%arg0: i32, %arg1: i32) -> (i32, i32, i32, i32) {
    %c0_i32 = arith.constant 0 : i32
    %c0_i32_0 = arith.constant 0 : i32
    %c0_i32_1 = arith.constant 0 : i32
    return %arg0, %arg1, %c0_i32, %c0_i32_0 : i32, i32, i32, i32
  }
  func.func @transform_1(%arg0: i32, %arg1: i32) -> (i32, i32, i32) {
    %c0_i32 = arith.constant 0 : i32
    %c0_i32_0 = arith.constant 0 : i32
    return %arg0, %arg1, %c0_i32 : i32, i32, i32
  }
  func.func @transform_2(%arg0: i32, %arg1: i32) -> (i32, i32, i32) {
    %c0_i32 = arith.constant 0 : i32
    %c0_i32_0 = arith.constant 0 : i32
    %c0_i32_1 = arith.constant 0 : i32
    return %arg0, %c0_i32, %c0_i32_0 : i32, i32, i32
  }
  func.func @transform_3(%arg0: i32, %arg1: i32) -> (i32, i32) {
    %c0_i32 = arith.constant 0 : i32
    %c0_i32_0 = arith.constant 0 : i32
    %c0_i32_1 = arith.constant 0 : i32
    return %c0_i32, %c0_i32_0 : i32, i32
  }
  func.func @transform_4(%arg0: i32, %arg1: i32) -> (i32, i32, i32) {
    %c0_i32 = arith.constant 0 : i32
    %c0_i32_0 = arith.constant 0 : i32
    return %arg0, %c0_i32, %arg1 : i32, i32, i32
  }
}

</mosaic_0001>

<bundles_post_ra>
// kernel: tpu_custom_call.1
= control target key start
LH: loop header
LB: loop body
LE: loop exit
PB: predicated region body
PF: predicated region fallthrough
CT: control target
= control target key end

     0   :  { %s1534_s0 = inlined_call_operand.hbm [shape: f32[2,16,16,32], index: 0, kind: input, shape index: {}]   ;;  %s1535_s1 = inlined_call_operand.hbm [shape: f32[2,16,64], index: 1, kind: input, shape index: {}]   ;;  %s1536_s2 = inlined_call_operand.hbm [shape: f32[2,16,64], index: 2, kind: input, shape index: {}]   ;;  %s1537_s3 = inlined_call_operand.hbm [shape: f32[32,64], index: 3, kind: input, shape index: {}]   ;;  %s1538_s4 = inlined_call_operand.hbm [shape: f32[2,64,256], index: 4, kind: output, shape index: {}]  }
   0x1   :  { %1553 = sst [smem:[#allocation29_spill]] %s1535_s1 }
   0x2   :  { %1554 = sst [smem:[#allocation30_spill]] %s1537_s3 }
   0x3   :  { %1555 = sst [smem:[#allocation31_spill]] %s1538_s4 }
   0x4   :  { %9 = vsyncpa [#allocation3], 0 }
   0x5   :  { %11 = vsyncpa [#allocation3 + $0x1], 0 }
   0x6   :  { %12 = vsyncpa [#allocation6], 0 }
   0x7   :  { %14 = vsyncpa [#allocation6 + $0x1], 0 }
   0x8   :  { %15 = vsyncpa [#allocation9], 0 }
   0x9   :  { %16 = vsyncpa [#allocation4], 0 }
   0xa   :  { %18 = vsyncpa [#allocation4 + $0x1], 0  ;;  %s1187_s15 = smov 0   ;;  %s1189_s16 = smov 0  }
   0xb   :  { %s1191_s17 = smov 0   ;;  %s1193_s18 = smov 0  }
   0xc   :  { %s1195_s19 = smov 0   ;;  %s1197_s20 = smov 0  }
   0xd   :  { %s1199_s21 = smov 0   ;;  %s1201_s22 = smov 0  }
   0xe   :  { %s1203_s23 = smov 0   ;;  %s1205_s24 = smov 0  }
   0xf   :  { %s1207_s25 = smov 0  }
  0x10 LB: > { %1556 = sst [smem:[#allocation16_spill]] %s1126_s18  ;;  %s1243_s26 = sadd.s32 4294967295, %s1154_s25   ;;  %s1154_s25 = sphi %s1207_s25, %s24_s25   ;;  %s1150_s24 = sphi %s1205_s24, %s1602_s24   ;;  %s1146_s23 = sphi %s1203_s23, %s1594_s23   ;;  %s1142_s22 = sphi %s1201_s22, %s1601_s22   ;;  %s1138_s21 = sphi %s1199_s21, %s1593_s21   ;;  %s1134_s20 = sphi %s1197_s20, %s1592_s20   ;;  %s1130_s19 = sphi %s1195_s19, %s1600_s19   ;;  %s1126_s18 = sphi %s1193_s18, %s1599_s18   ;;  %s1122_s17 = sphi %s1191_s17, %s1598_s17   ;;  %s1118_s16 = sphi %s1189_s16, %s1597_s16   ;;  %s1114_s15 = sphi %s1187_s15, %s1596_s15  }
  0x11   : > { %1557 = sst [smem:[#allocation17_spill]] %s1134_s20  ;;  %s716_s27 = sadd.s32 4294967294, %s1154_s25  }
  0x12   : > { %1558 = sst [smem:[#allocation18_spill]] %s1138_s21  ;;  %s33_s28 = sadd.s32 1, %s1146_s23 }
  0x13   : > { %1559 = sst [smem:[#allocation19_spill]] %s1142_s22  ;;  %s36_s29 = sadd.s32 1, %s1150_s24 }
  0x14   : > { %1560 = sst [smem:[#allocation20_spill]] %s1146_s23  ;;  %p34_p0 = scmp.ge.s32.totalorder %s33_s28, 2 }
  0x15   : > { %1561 = sst [smem:[#allocation21_spill]] %s1154_s25  ;;  %s45_s30 = sadd.s32 1, %s1134_s20 }
  0x16   : > { %p52_p1 = scmp.ne.s32.totalorder %s1134_s20, %s1130_s19  ;;  %p53_p2 = scmp.eq.s32.totalorder %s1154_s25, 0 }
  0x17   : > { %s1604_s28 = smov (%p34_p0, %s33_s28), 0  ;;  %s1606_s29 = smov (!%p34_p0, %s36_s29), %s1150_s24 }
  0x18   : > { %1562 = sst [smem:[#allocation22_spill]] %s1604_s28  ;;  %s41_s5 = ssub.s32 %s1146_s23, %s1604_s28 }
  0x19   : > { %p1262_p3 = por %p53_p2, %p52_p1  ;;  %p38_p4 = scmp.ge.s32.totalorder %s1606_s29, 2 }
  0x1a   : > { %p1539_p5 = scmp.ne.s32.totalorder %s1130_s19, %s1126_s18  ;;  %p59_p6 = scmp.eq.s32.totalorder %s1243_s26, 0 }
  0x1b   : > { %s99_s7 = sadd.s32 1, %s1122_s17  ;;  %s1608_s29 = smov (%p38_p4, %s1606_s29), 0 }
  0x1c   : > { %1564 = sst [smem:[#allocation23_spill]] %s1608_s29  ;;  %p1277_p7 = por %p59_p6, %p1539_p5 }
  0x1d   : > { %p106_p8 = scmp.ne.s32.totalorder %s1122_s17, %s1118_s16  ;;  %s40_s9 = ssub.s32 %s1150_s24, %s1608_s29 }
  0x1e   : > { %p112_p9 = scmp.ne.s32.totalorder %s1118_s16, %s1114_s15  ;;  %s42_s10 = sor.u32 %s41_s5, %s40_s9 }
  0x1f   : > { %p97_p10 = scmp.eq.s32.totalorder %s40_s9, 0  ;;  %p43_p11 = scmp.eq.s32.totalorder %s42_s10, 0 }
  0x20   : > { %p1289_p12 = por %p106_p8, %p53_p2  ;;  %p1301_p13 = por %p112_p9, %p59_p6 }
  0x21   : > { %s1294_s12 = scalar_select %p97_p10, %s1122_s17, %s99_s7  }
  0x22   : > { %s1297_s13 = scalar_select %p43_p11, %s1134_s20, %s45_s30  }
  0x23   : > { %1567 = sst [smem:[#allocation24_spill]] %s1294_s12  ;;  %p159_p0 = scmp.eq.s32.totalorder %s1243_s26, 3 }
  0x24   : > { %1568 = sst [smem:[#allocation25_spill]] %s1297_s13  ;;  %p165_p4 = scmp.eq.s32.totalorder %s716_s27, 3 }
  0x25   : > { %s1569_s14 = scalar_select %p1301_p13, 1, 0 }
  0x26   : > { %p1309_p5 = por %p159_p0, %p52_p1  ;;  %p1573_p2 = scmp.ne.s32.totalorder %s1130_s19, %s1126_s18 }
  0x27   : > { %1570 = sst [smem:[#allocation26_spill]] %s1569_s14  ;;  %p803_p10 = scmp.lt.s32.totalorder %s1154_s25, 4 }
  0x28   : > { %s1571_s15 = scalar_select %p1309_p5, 1, 0 }
  0x29   : > { %p1316_p8 = por %p165_p4, %p1573_p2  ;;  %s1322_s30 = sand.u32 1, %s1134_s20  }
  0x2a   : > { %1572 = sst [smem:[#allocation27_spill]] %s1571_s15  ;;  %s224_s7 = sand.u32 1, %s1154_s25  }
  0x2b   : > { %s1574_s5 = scalar_select %p1316_p8, 1, 0 }
  0x2c   : > { %p1328_p9 = pnand %p803_p10, %p1262_p3  ;;  %s725_s10 = sshll.u32 %s1322_s30, 3 }
  0x2d   : > { %1575 = sst [smem:[#allocation28_spill]] %s1574_s5  ;;  %s726_s29 = sshll.u32 %s1150_s24, 1 }
  0x2e   : > { %s228_s28 = scalar_lea.vmem [#allocation5], %s725_s10  ;;  %s232_s12 = sadd.s32 %s1146_s23, %s726_s29 }
  0x2f   : > { %s238_s13 = sshll.u32 %s228_s28, 4  ;;  %s727_s20 = sshll.u32 %s232_s12, 3  ;;  %s239_s13 = int_to_ptr.vmem [resolvable:$true] %s238_s13 }
  0x30   : > { %p1337_p1 = pnand %p803_p10, %p1289_p12  ;;  %s1578_s1 = sld [smem:[#allocation29_spill]] }
  0x31   : > { %s1344_s15 = scalar_lea.sflag [#allocation6], %s224_s7  ;;  %p717_p3 = scmp.ge.s32.totalorder %s1154_s25, 1 }
  0x32   : > { %p172_p11 = scmp.lt.s32.totalorder %s1154_s25, 5  ;;  %s1579_s3 = sld [smem:[#allocation30_spill]] }
  0x33   : > { %s1157_s9 = smov 128   ;;  %s1158_s10 = smov 8  }
  0x34   : > { %p1354_p12 = pnand %p717_p3, %p172_p11  ;;  %s1581_s28 = sshll.u32 %s1322_s30, 7 }
  0x35   : > { %s203_s29 = scalar_lea.vmem [#allocation2], %s1581_s28  ;;  %s200_s14 = scalar_lea.sflag [#allocation3], %s1322_s30 }
  0x36   : > { %s234_s18 = scalar_lea.hbm %s1578_s1, %s727_s20  ;;  %p784_p0 = pneg %p1354_p12 }
  0x37   : > { %s236_s4 = sshll.u32 %s234_s18, 4  ;;  %s1156_s18 = smov [#allocation8]   ;;  %s237_s4 = int_to_ptr.hbm [resolvable:$true] %s236_s4 }
  0x38   : > { %794 = dma.hbm_to_vmem [thread:$0]  (!%p1328_p9), %s237_s4, 128, %s239_s13, %s1344_s15  }
  0x39   : > { %s183_s11 = sshll.u32 %s1579_s3, 4  ;;  %s185_s20 = sshll.u32 %s1156_s18, 4  ;;  %s184_s11 = int_to_ptr.hbm [resolvable:$true] %s183_s11  ;;  %s186_s20 = int_to_ptr.vmem [resolvable:$true] %s185_s20 }
  0x3a   : > { %p785_p4 = pnand %p784_p0, %p59_p6  ;;  %s758_s4 = sshll.u32 %s1146_s23, 4 }
  0x3b   : > { %s723_s13 = sshll.u32 %s1150_s24, 5  ;;  %s214_s1 = sshll.u32 %s203_s29, 4  ;;  %s215_s1 = int_to_ptr.vmem [resolvable:$true] %s214_s1 }
  0x3c   : > { %s209_s7 = sadd.s32 %s758_s4, %s723_s13  ;;  %s247_s23 = sand.u32 1, %s1122_s17  }
  0x3d   : > { %787 = dma.hbm_to_vmem [thread:$0]  (!%p785_p4), %s184_s11, 512, %s186_s20, [#allocation9], %s1157_s9, %s1157_s9, %s1158_s10  }
  0x3e   : > { %s724_s6 = sshll.u32 %s209_s7, 3  ;;  %s728_s22 = sshll.u32 %s247_s23, 4 }
  0x3f   : > { %s211_s25 = scalar_lea.hbm %s1534_s0, %s724_s6  ;;  %s759_s4 = sshll.u32 %s1150_s24, 4 }
  0x40   : > { %s212_s21 = sshll.u32 %s211_s25, 4  ;;  %s254_s13 = scalar_lea.hbm %s1536_s2, %s759_s4  ;;  %s213_s21 = int_to_ptr.hbm [resolvable:$true] %s212_s21 }
  0x41   : > { %791 = dma.hbm_to_vmem [thread:$0]  (!%p1328_p9), %s213_s21, 2048, %s215_s1, %s200_s14, %s1157_s9, %s1157_s9, %s1158_s10  }
  0x42   : > { %s249_s7 = scalar_lea.vmem [#allocation7], %s728_s22  ;;  %s255_s29 = sshll.u32 %s254_s13, 4  ;;  %s256_s29 = int_to_ptr.hbm [resolvable:$true] %s255_s29 }
  0x43   : > { %s257_s28 = sshll.u32 %s249_s7, 4  ;;  %269 = sbr.rel (%p1354_p12) target bundleno = 446 (0x1be), region = 36  ;;  %s258_s28 = int_to_ptr.vmem [resolvable:$true] %s257_s28 }
  0x44   : > { %797 = dma.hbm_to_vmem [thread:$0]  (!%p1337_p1), %s256_s29, 256, %s258_s28, %s1344_s15, %s1157_s9, %s1157_s9, %s1158_s10  }
  0x45   : > { %s1383_s3 = sand.u32 (!%p1354_p12), 1, %s1130_s19  }
  0x46   : > { %s732_s1 = sshll.u32 (!%p1354_p12), %s1383_s3, 7  ;;  %s272_s21 = scalar_lea.sflag (!%p1354_p12), [#allocation3], %s1383_s3 }
  0x47   : > { %s1387_s23 = scalar_lea.vmem (!%p1354_p12), [#allocation2], %s732_s1 }
  0x48   : > { %1093 = dma.done.wait (%p1277_p7), %s272_s21, 2048  }
  0x49   : > { %1095 = vsyncadd (%p1277_p7), %s272_s21, 4294965248  ;;  %s281_s22 = sand.u32 1, %s1243_s26   ;;  %s733_s25 = sshll.u32 %s1383_s3, 3 }
  0x4a   : > { %s282_s14 = scalar_lea.sflag [#allocation6], %s281_s22  ;;  %s1395_s15 = scalar_lea.vmem [#allocation5], %s733_s25 }
  0x4b   : > { %1097 = dma.done.wait (%p1277_p7), %s282_s14, 128  }
  0x4c   : > { %1099 = vsyncadd (%p1277_p7), %s282_s14, 4294967168  ;;  %s293_s30 = sand.u32 1, %s1118_s16  }
  0x4d   : > { %s1402_s27 = sshll.u32 %s293_s30, 4 }
  0x4e   : > { %s295_s12 = scalar_lea.vmem [#allocation7], %s1402_s27 }
  0x4f   : > { %1101 = dma.done.wait (%p1301_p13), %s282_s14, 256  }
  0x50   : > { %1103 = vsyncadd (%p1301_p13), %s282_s14, 4294967040 }
  0x51   : > { %1105 = dma.done.wait (%p59_p6), [#allocation9], 512  }
  0x52   : > { %1107 = vsyncadd (%p59_p6), [#allocation9], 4294966784  ;;  %v356_v0 = vld [vmem:[#allocation8 + $0x18] sm:$0xff]  ;;  %v355_v1 = vld [vmem:[#allocation8 + $0x10] sm:$0xff]  ;;  %vm382_vm0 = vcmask 261120   ;;  %s1583_s26 = sld [smem:[#allocation19_spill]] }
  0x53   : > { %443 = vmatpush.msra.mxu0 %v356_v0  ;;  %760 = vmatpush.msra.mxu1 %v356_v0  ;;  %v354_v2 = vld [vmem:[#allocation8 + $0x8] sm:$0xff]  ;;  %v353_v3 = vld [vmem:[#allocation8] sm:$0xff]  ;;  %v337_v4 = vld [vmem:[%s1387_s23] sm:$0xff]  ;;  %s1584_s8 = sld [smem:[#allocation18_spill]]  ;;  %s736_s9 = sshll.u32 %s1383_s3, 6 }
  0x54   : > { %761 = vmatpush.msra.mxu2 %v356_v0  ;;  %762 = vmatpush.msra.mxu3 %v356_v0  ;;  %v341_v5 = vld [vmem:[%s1387_s23 + $0x20] sm:$0xff]  ;;  %v338_v8 = vld [vmem:[%s1387_s23 + $0x8] sm:$0xff]  ;;  %v339_v12 = vld [vmem:[%s1387_s23 + $0x10] sm:$0xff]  ;;  %s335_s10 = scalar_lea.vmem [#allocation10], %s736_s9  ;;  %s1586_s7 = sld [smem:[#allocation31_spill]] }
  0x55   : > { %444 = vmatpush.msra.mxu0 %v355_v1  ;;  %763 = vmatpush.msra.mxu1 %v355_v1  ;;  %v345_v6 = vld [vmem:[%s1387_s23 + $0x40] sm:$0xff]  ;;  %v342_v9 = vld [vmem:[%s1387_s23 + $0x28] sm:$0xff]  ;;  %v343_v13 = vld [vmem:[%s1387_s23 + $0x30] sm:$0xff]  ;;  %s568_s29 = sshll.u32 %s335_s10, 4  ;;  %s555_s21 = scalar_lea.sflag [#allocation4], %s1383_s3  ;;  %s569_s29 = int_to_ptr.vmem [resolvable:$true] %s568_s29 }
  0x56   : > { %764 = vmatpush.msra.mxu2 %v355_v1  ;;  %765 = vmatpush.msra.mxu3 %v355_v1  ;;  %v349_v7 = vld [vmem:[%s1387_s23 + $0x60] sm:$0xff]  ;;  %v346_v10 = vld [vmem:[%s1387_s23 + $0x48] sm:$0xff]  ;;  %v347_v14 = vld [vmem:[%s1387_s23 + $0x50] sm:$0xff] }
  0x57   : > { %445 = vmatpush.msra.mxu0 %v354_v2  ;;  %766 = vmatpush.msra.mxu1 %v354_v2  ;;  %v350_v11 = vld [vmem:[%s1387_s23 + $0x68] sm:$0xff]  ;;  %v351_v15 = vld [vmem:[%s1387_s23 + $0x70] sm:$0xff]  ;;  %v340_v16 = vld [vmem:[%s1387_s23 + $0x18] sm:$0xff] }
  0x58   : > { %767 = vmatpush.msra.mxu2 %v354_v2  ;;  %768 = vmatpush.msra.mxu3 %v354_v2  ;;  %v344_v17 = vld [vmem:[%s1387_s23 + $0x38] sm:$0xff]  ;;  %v1446_v20 = vld [vmem:[%s1395_s15] sm:$0xff]  ;;  %v1451_v23 = vld [vmem:[%s295_s12] sm:$0xff]  ;;  %s754_s6 = sshll.u32 %s1583_s26, 4 }
  0x59   : > { %446 = vmatpush.msra.mxu0 %v353_v3  ;;  %769 = vmatpush.msra.mxu1 %v353_v3  ;;  %v348_v18 = vld [vmem:[%s1387_s23 + $0x58] sm:$0xff]  ;;  %v366_v21 = vperm.slane %v1446_v20, 0  ;;  %v359_v29 = vrot.slane %v1446_v20, 1  ;;  %v360_v36 = vrot.slane %v1446_v20, 2  ;;  %v361_v45 = vrot.slane %v1446_v20, 3  ;;  %s565_s18 = sadd.s32 %s1584_s8, %s754_s6 }
  0x5a   : > { %737 = vmatmul.msk.f32.vlgmr.msra.gmra.mxu0 %vm382_vm0, %v337_v4  ;;  %741 = vmatmul.msk.f32.vlgmr.msra.gmra.mxu1 %vm382_vm0, %v341_v5  ;;  %v352_v19 = vld [vmem:[%s1387_s23 + $0x78] sm:$0xff]  ;;  %v362_v54 = vrot.slane %v1446_v20, 4  ;;  %v363_v61 = vrot.slane %v1446_v20, 5  ;;  %s755_s11 = sshll.u32 %s565_s18, 3  ;;  %s1040_s15 = scalar_lea.hbm %s1586_s7, 256 }
  0x5b   : > { %770 = vmatpush.msra.mxu2 %v353_v3  ;;  %771 = vmatpush.msra.mxu3 %v353_v3  ;;  %v1456_v27 = vld [vmem:[%s295_s12 + $0x8] sm:$0xff]  ;;  %v367_v31 = vperm.slane %v359_v29, 0  ;;  %v368_v39 = vperm.slane %v360_v36, 0  ;;  %v369_v48 = vperm.slane %v361_v45, 0  ;;  %s567_s28 = scalar_lea.hbm %s1586_s7, %s755_s11 }
  0x5c   : > { %745 = vmatmul.msk.f32.vlgmr.msra.gmra.mxu2 %vm382_vm0, %v345_v6  ;;  %749 = vmatmul.msk.f32.vlgmr.msra.gmra.mxu3 %vm382_vm0, %v349_v7  ;;  %v370_v56 = vperm.slane %v362_v54, 0  ;;  %v371_v0 = vperm.slane %v363_v61, 0  ;;  %v364_v6 = vrot.slane %v1446_v20, 6  ;;  %s570_s1 = sshll.u32 %s567_s28, 4  ;;  %s571_s1 = int_to_ptr.hbm [resolvable:$true] %s570_s1 }
  0x5d   : > { %s1034_s23 = sshra.s32 %s571_s1, 4  ;;  %s1035_s23 = int_to_ptr.hbm [resolvable:$true] %s1034_s23 }
  0x5e   : > { %s1036_s22 = scalar_lea.hbm %s1035_s23, 64  ;;  %p1041_p2 = scmp.lt.s32.totalorder %s1035_s23, %s1586_s7 }
  0x5f   : > { %p1037_p6 = scmp.ne.s32.totalorder %s1035_s23, %s1036_s22  ;;  %p1042_p10 = scmp.lt.s32.totalorder %s1040_s15, %s1036_s22 }
  0x61   : > { %p1038_p7 = pnand %p1037_p6, %p1309_p5  ;;  %p1043_p9 = por %p1042_p10, %p1041_p2 }
  0x62   : > { %738 = vmatmul.msk.f32.gmra.mxu0 %vm382_vm0, %v338_v8  ;;  %742 = vmatmul.msk.f32.gmra.mxu1 %vm382_vm0, %v342_v9  ;;  %v372_v8 = vperm.slane %v364_v6, 0 }
  0x63   : > { %p1039_p13 = pneg %p1038_p7 }
  0x64   : > { %746 = vmatmul.msk.f32.gmra.mxu2 %vm382_vm0, %v346_v10  ;;  %750 = vmatmul.msk.f32.gmra.mxu3 %vm382_vm0, %v350_v11 }
  0x65   : > { %p1044_p1 = pnand %p1043_p9, %p1039_p13 }
  0x6a   : > { %739 = vmatmul.msk.f32.gmra.mxu0 %vm382_vm0, %v339_v12  ;;  %743 = vmatmul.msk.f32.gmra.mxu1 %vm382_vm0, %v343_v13  ;;  %v365_v13 = vrot.slane %v1446_v20, 7 }
  0x6c   : > { %747 = vmatmul.msk.f32.gmra.mxu2 %vm382_vm0, %v347_v14  ;;  %751 = vmatmul.msk.f32.gmra.mxu3 %vm382_vm0, %v351_v15 }
  0x72   : > { %740 = vmatmul.msk.f32.gmra.mxu0 %vm382_vm0, %v340_v16  ;;  %744 = vmatmul.msk.f32.gmra.mxu1 %vm382_vm0, %v344_v17  ;;  %v373_v16 = vperm.slane %v365_v13, 0 }
  0x74   : > { %748 = vmatmul.msk.f32.gmra.mxu2 %vm382_vm0, %v348_v18  ;;  %752 = vmatmul.msk.f32.gmra.mxu3 %vm382_vm0, %v352_v19 }
  0xd7   : > { %v448_v22 = vpop.f32.mrf.mxu0  ;;  %v460_v35 = vpop.f32.mrf.mxu1 }
  0xd8   : > { %v449_v24 = vadd.f32 %v448_v22, %v366_v21  ;;  %v461_v41 = vadd.f32 %v460_v35, %v368_v39 }
  0xda   : > { %v498_v25 = vadd.f32 %v1451_v23, %v449_v24  ;;  %v502_v43 = vadd.f32 %v1451_v23, %v461_v41 }
  0xdc   : > { %514 = vxpose.xlu0.b32.start [1/16] (narrow) %v498_v25, 64 }
  0xdf   : > { %v451_v26 = vpop.f32.mrf.mxu0  ;;  %v463_v42 = vpop.f32.mrf.mxu1 }
  0xe0   : > { %v452_v28 = vadd.f32 %v451_v26, %v366_v21  ;;  %v464_v44 = vadd.f32 %v463_v42, %v368_v39  ;;  %v472_v52 = vpop.f32.mrf.mxu2  ;;  %v484_v4 = vpop.f32.mrf.mxu3 }
  0xe1   : > { %v473_v57 = vadd.f32 %v472_v52, %v370_v56  ;;  %v485_v9 = vadd.f32 %v484_v4, %v372_v8 }
  0xe2   : > { %v499_v30 = vadd.f32 %v1456_v27, %v452_v28  ;;  %v503_v47 = vadd.f32 %v1456_v27, %v464_v44 }
  0xe3   : > { %v506_v59 = vadd.f32 %v1451_v23, %v473_v57  ;;  %v510_v11 = vadd.f32 %v1451_v23, %v485_v9 }
  0xe4   : > { %515 = vxpose.xlu0.b32.cont [2/16] (narrow) %v499_v30, 64 }
  0xe7   : > { %v454_v32 = vpop.f32.mrf.mxu0  ;;  %v466_v46 = vpop.f32.mrf.mxu1 }
  0xe8   : > { %v455_v33 = vadd.f32 %v454_v32, %v367_v31  ;;  %v467_v49 = vadd.f32 %v466_v46, %v369_v48  ;;  %v475_v58 = vpop.f32.mrf.mxu2  ;;  %v487_v10 = vpop.f32.mrf.mxu3 }
  0xe9   : > { %v476_v60 = vadd.f32 %v475_v58, %v370_v56  ;;  %v488_v12 = vadd.f32 %v487_v10, %v372_v8 }
  0xea   : > { %v500_v34 = vadd.f32 %v1451_v23, %v455_v33  ;;  %v504_v50 = vadd.f32 %v1451_v23, %v467_v49 }
  0xeb   : > { %v507_v63 = vadd.f32 %v1456_v27, %v476_v60  ;;  %v511_v15 = vadd.f32 %v1456_v27, %v488_v12 }
  0xec   : > { %516 = vxpose.xlu0.b32.cont [3/16] (narrow) %v500_v34, 64 }
  0xef   : > { %v457_v37 = vpop.f32.mrf.mxu0  ;;  %v469_v51 = vpop.f32.mrf.mxu1 }
  0xf0   : > { %v458_v38 = vadd.f32 %v457_v37, %v367_v31  ;;  %v470_v53 = vadd.f32 %v469_v51, %v369_v48  ;;  %v478_v62 = vpop.f32.mrf.mxu2  ;;  %v490_v14 = vpop.f32.mrf.mxu3 }
  0xf1   : > { %v479_v1 = vadd.f32 %v478_v62, %v371_v0  ;;  %v491_v17 = vadd.f32 %v490_v14, %v373_v16 }
  0xf2   : > { %v501_v40 = vadd.f32 %v1456_v27, %v458_v38  ;;  %v505_v55 = vadd.f32 %v1456_v27, %v470_v53 }
  0xf3   : > { %v508_v2 = vadd.f32 %v1451_v23, %v479_v1  ;;  %v512_v18 = vadd.f32 %v1451_v23, %v491_v17 }
  0xf4   : > { %517 = vxpose.xlu0.b32.cont [4/16] (narrow) %v501_v40, 64 }
  0xf8   : > { %v481_v3 = vpop.f32.mrf.mxu2  ;;  %v493_v19 = vpop.f32.mrf.mxu3 }
  0xf9   : > { %v482_v5 = vadd.f32 %v481_v3, %v371_v0  ;;  %v494_v21 = vadd.f32 %v493_v19, %v373_v16 }
  0xfb   : > { %v509_v7 = vadd.f32 %v1456_v27, %v482_v5  ;;  %v513_v22 = vadd.f32 %v1456_v27, %v494_v21 }
  0xfc   : > { %518 = vxpose.xlu0.b32.cont [5/16] (narrow) %v502_v43, 64 }
 0x104   : > { %519 = vxpose.xlu0.b32.cont [6/16] (narrow) %v503_v47, 64 }
 0x10c   : > { %520 = vxpose.xlu0.b32.cont [7/16] (narrow) %v504_v50, 64 }
 0x114   : > { %521 = vxpose.xlu0.b32.cont [8/16] (narrow) %v505_v55, 64 }
 0x11c   : > { %522 = vxpose.xlu0.b32.cont [9/16] (narrow) %v506_v59, 64 }
 0x124   : > { %523 = vxpose.xlu0.b32.cont [10/16] (narrow) %v507_v63, 64 }
 0x12c   : > { %524 = vxpose.xlu0.b32.cont [11/16] (narrow) %v508_v2, 64 }
 0x134   : > { %525 = vxpose.xlu0.b32.cont [12/16] (narrow) %v509_v7, 64 }
 0x13c   : > { %526 = vxpose.xlu0.b32.cont [13/16] (narrow) %v510_v11, 64 }
 0x144   : > { %527 = vxpose.xlu0.b32.cont [14/16] (narrow) %v511_v15, 64 }
 0x14c   : > { %528 = vxpose.xlu0.b32.cont [15/16] (narrow) %v512_v18, 64 }
 0x154   : > { %529 = vxpose.xlu0.b32.end [16/16] (narrow) %v513_v22, 64 }
 0x180   : > { %v530_v24 = vpop.trf.xlu0 }
 0x181   : > { %546 = vst [vmem:[%s335_s10] sm:$0xff] %v530_v24 }
 0x188   : > { %v531_v20 = vpop.trf.xlu0 }
 0x189   : > { %547 = vst [vmem:[%s335_s10 + $0x8] sm:$0xff] %v531_v20 }
 0x190   : > { %v532_v25 = vpop.trf.xlu0 }
 0x191   : > { %548 = vst [vmem:[%s335_s10 + $0x10] sm:$0xff] %v532_v25 }
 0x198   : > { %v533_v26 = vpop.trf.xlu0 }
 0x199   : > { %549 = vst [vmem:[%s335_s10 + $0x18] sm:$0xff] %v533_v26 }
 0x1a0   : > { %v534_v28 = vpop.trf.xlu0 }
 0x1a1   : > { %550 = vst [vmem:[%s335_s10 + $0x20] sm:$0xff] %v534_v28 }
 0x1a8   : > { %v535_v23 = vpop.trf.xlu0 }
 0x1a9   : > { %551 = vst [vmem:[%s335_s10 + $0x28] sm:$0xff] %v535_v23 }
 0x1b0   : > { %v536_v27 = vpop.trf.xlu0 }
 0x1b1   : > { %552 = vst [vmem:[%s335_s10 + $0x30] sm:$0xff] %v536_v27 }
 0x1b8   : > { %v537_v29 = vpop.trf.xlu0 }
 0x1b9   : > { %553 = vst [vmem:[%s335_s10 + $0x38] sm:$0xff] %v537_v29 }
 0x1ba   : > { %1047 = shalt.err (!%p1044_p1)
}
 0x1bb   : > { %s1159_s3 = smov 128   ;;  %s1160_s27 = smov 256  }
 0x1bc   : > { %s1161_s12 = smov 8  }
 0x1bd   : > { %782 = dma.vmem_to_hbm [thread:$0]  (%p1309_p5), %s569_s29, 1024, %s571_s1, %s555_s21, %s1159_s3, %s1160_s27, %s1161_s12  }
 0x1be PF: > { %s1587_s26 = sld [smem:[#allocation21_spill]] }
 0x1bf   : > { %s1588_s8 = sld [smem:[#allocation16_spill]] }
 0x1c4   : > { %p805_p3 = scmp.ge.s32.totalorder %s1587_s26, 2 }
 0x1c5   : > { %s585_s10 = sand.u32 1, %s1588_s8  }
 0x1c6   : > { %p799_p11 = pnand %p805_p3, %p1316_p8  ;;  %s586_s6 = scalar_lea.sflag [#allocation4], %s585_s10 }
 0x1c8   : > { %p800_p12 = pneg %p799_p11 }
 0x1ca   : > { %1109 = dma.done.wait (%p800_p12), %s586_s6, 1024  }
 0x1cb   : > { %1111 = vsyncadd (%p800_p12), %s586_s6, 4294966272  ;;  %s24_s25 = sadd.s32 1, %s1587_s26   ;;  %s1590_s18 = sld [smem:[#allocation24_spill]] }
 0x1cc   : > { %p21_p0 = scmp.ge.s32.totalorder %s24_s25, 6   ;;  %s1591_s4 = sld [smem:[#allocation17_spill]] }
 0x1cd   : > { %s1592_s20 = sld [smem:[#allocation25_spill]]  ;;  %s1596_s15 = smov %s1118_s16 }
 0x1ce   : > { %s1593_s21 = sld [smem:[#allocation20_spill]]  ;;  %s1597_s16 = smov %s1122_s17 }
 0x1cf   : > { %s1594_s23 = sld [smem:[#allocation22_spill]]  ;;  %s1601_s22 = smov %s1150_s24 }
 0x1d0   : > { %s1595_s11 = sld [smem:[#allocation23_spill]] }
 0x1d1   : > { %s1598_s17 = smov %s1590_s18  ;;  %s1599_s18 = smov %s1130_s19 }
 0x1d2   : > { %s1600_s19 = smov %s1591_s4  ;;  %23 = sbr.rel (!%p21_p0) target bundleno = 16 (0x10), region = 109 }
 0x1d6   : > { %s1602_s24 = smov %s1595_s11 }
 0x1d7   :  { %592 = vsyncpa [#allocation3], 1 }
 0x1d8   :  { %594 = vsyncpa [#allocation3 + $0x1], 1 }
 0x1d9   :  { %595 = vsyncpa [#allocation6], 1 }
 0x1da   :  { %597 = vsyncpa [#allocation6 + $0x1], 1 }
 0x1db   :  { %598 = vsyncpa [#allocation9], 1 }
 0x1dc   :  { %599 = vsyncpa [#allocation4], 1 }
 0x1dd   :  { %601 = vsyncpa [#allocation4 + $0x1], 1 }

</bundles_post_ra>
